<compile_context>
chip_gen: v7x
topology: tpu7x:2x2x1
jax: 0.10.0
libtpu: 0.0.40
codegen_flags: <defaults>
</compile_context>

<pallas_src>
import jax
import jax.numpy as jnp
from jax import lax
from jax.experimental import pallas as pl
from jax.experimental.pallas import tpu as pltpu


def _round_up(x, m):
    return ((x + m - 1) // m) * m


# ---------------------------------------------------------------------------
# Kernel 1: fused LayerNorm (embedding post-norm) + output Linear projection.
# ---------------------------------------------------------------------------
def _emission_kernel(x_ref, gamma_ref, beta_ref, w_ref, b_ref, out_ref):
    x = x_ref[...].astype(jnp.float32)                          # [tm, H]
    mu = jnp.mean(x, axis=-1, keepdims=True)
    var = jnp.mean((x - mu) * (x - mu), axis=-1, keepdims=True)
    # TODO(synk): eps=1e-6 follows UER-style LayerNorm; nn.LayerNorm default is 1e-5.
    xn = (x - mu) * lax.rsqrt(var + 1e-6)
    xn = xn * gamma_ref[...] + beta_ref[...]                    # [tm, H]
    out_ref[...] = (
        jnp.dot(xn, w_ref[...], preferred_element_type=jnp.float32) + b_ref[...]
    )


def emissions_pallas(emb2d, gamma, beta, w, b):
    R, H = emb2d.shape
    K = w.shape[1]
    LANE = 128
    Kp = _round_up(K, LANE)                       # lane-dense output / full MXU N
    tm = min(256, _round_up(R, 8))                # big row tiles amortize grid overhead
    R_pad = _round_up(R, tm)

    x = emb2d if R_pad == R else jnp.pad(emb2d, ((0, R_pad - R), (0, 0)))
    wp = w if Kp == K else jnp.pad(w, ((0, 0), (0, Kp - K)))
    bp = b if Kp == K else jnp.pad(b, ((0, 0), (0, Kp - K)))

    out = pl.pallas_call(
        _emission_kernel,
        out_shape=jax.ShapeDtypeStruct((R_pad, Kp), jnp.float32),
        grid=(R_pad // tm,),
        in_specs=[
            pl.BlockSpec((tm, H), lambda i: (i, 0)),
            pl.BlockSpec((1, H), lambda i: (0, 0)),
            pl.BlockSpec((1, H), lambda i: (0, 0)),
            pl.BlockSpec((H, Kp), lambda i: (0, 0)),
            pl.BlockSpec((1, Kp), lambda i: (0, 0)),
        ],
        out_specs=pl.BlockSpec((tm, Kp), lambda i: (i, 0)),
        compiler_params=pltpu.CompilerParams(dimension_semantics=("parallel",)),
    )(x, gamma, beta, wp, bp)
    return out[:R, :K]


# ---------------------------------------------------------------------------
# Kernel 2: CRF — gold-path score, log-partition (forward algorithm) and
# Viterbi decode (decode runs WITHOUT the mask, matching the reference).
# Data layout inside the kernel: tags on sublanes, batch on lanes.
# ---------------------------------------------------------------------------
def _crf_kernel(em_ref, tag_ref, mask_ref, trans_ref, start_ref, end_ref,
                llh_ref, pred_ref, hist_ref):
    T, K, B = em_ref.shape
    trans = trans_ref[...]                                       # [K, K] (i -> j)
    start = start_ref[...]                                       # [K, 1]
    end = end_ref[...]                                           # [K, 1]

    lane_iota = lax.broadcasted_iota(jnp.int32, (K, B), 0)       # tag index / sublane
    lane_iota_f = lane_iota.astype(jnp.float32)
    sub_iota = lax.broadcasted_iota(jnp.int32, (K, 1), 0)
    # Hoisted per-destination-tag constants (computed once, closed over by the loop).
    tcols = [trans[:, j:j + 1] for j in range(K)]                # K x [K, 1]
    row_ohs = [(sub_iota == j).astype(jnp.float32) for j in range(K)]

    def one_hot(tag_row):                                        # [1,B] i32 -> [K,B] f32
        return (lane_iota == tag_row).astype(jnp.float32)

    def lse0(x):                                                 # logsumexp over tags
        m = jnp.max(x, axis=0, keepdims=True)
        return jnp.log(jnp.sum(jnp.exp(x - m), axis=0, keepdims=True)) + m

    def argmax0(x):                                              # first argmax over tags
        m = jnp.max(x, axis=0, keepdims=True)
        sel = jnp.where(x == m, lane_iota_f, jnp.float32(K))
        return jnp.min(sel, axis=0, keepdims=True)               # [1, B] f32

    em0 = em_ref[0]                                              # [K, B]
    tag0 = one_hot(tag_ref[0])                                   # [K, B]
    init = start + em0                                           # [K, B]
    num0 = jnp.sum(init * tag0, axis=0, keepdims=True)           # [1, B]
    # NOTE: t=0 is unmasked, matching torchcrf's requirement that mask[0] == 1.

    def fwd_step(t, carry):
        num, alpha, vscore, prev_oh, last_oh = carry
        em_t = em_ref[t]                                         # [K, B]
        tag_row = tag_ref[t]                                     # [1, B] int32
        tag_oh = one_hot(tag_row)                                # [K, B]
        m_t = mask_ref[t]                                        # [1, B]

        alpha_new = jnp.zeros((K, B), jnp.float32)
        vmax_new = jnp.zeros((K, B), jnp.float32)
        bp = jnp.zeros((K, B), jnp.float32)
        trans_g = jnp.zeros((1, B), jnp.float32)
        # Unrolled over destination tags (K is small) — VPU/XLU only, no MXU.
        for j in range(K):
            tcol = tcols[j]                                      # [K, 1]
            # forward algorithm
            lse_j = lse0(alpha + tcol)                           # [1, B]
            alpha_new = alpha_new + row_ohs[j] * lse_j
            # Viterbi recursion
            v_j = vscore + tcol                                  # [K, B]
            vmax_new = vmax_new + row_ohs[j] * jnp.max(v_j, axis=0, keepdims=True)
            bp = bp + row_ohs[j] * argmax0(v_j)
            # gold transition score into tag j
            tg_j = jnp.sum(prev_oh * tcol, axis=0, keepdims=True)  # [1, B]
            trans_g = trans_g + tg_j * (tag_row == j).astype(jnp.float32)

        # numerator (gold path), masked
        em_g = jnp.sum(em_t * tag_oh, axis=0, keepdims=True)     # [1, B]
        num = num + (trans_g + em_g) * m_t
        last_oh = jnp.where(m_t > 0, tag_oh, last_oh)
        prev_oh = tag_oh

        # log-partition update, masked
        alpha = jnp.where(m_t > 0, alpha_new + em_t, alpha)

        # Viterbi update (no mask in decode, per reference)
        hist_ref[t] = bp.astype(jnp.int32)                       # [K, B] backpointers
        vscore = vmax_new + em_t
        return num, alpha, vscore, prev_oh, last_oh

    num, alpha, vscore, _, last_oh = lax.fori_loop(
        1, T, fwd_step, (num0, init, init, tag0, tag0))

    # numerator: end transition from the last unmasked gold tag
    num = num + jnp.sum(end * last_oh, axis=0, keepdims=True)

    # denominator: logsumexp over final forward scores
    denom = lse0(alpha + end)                                    # [1, B]
    llh_ref[...] = num - denom                                   # per-sequence llh

    # Viterbi backtrace -> int32 tag index per timestep
    vfin = vscore + end
    best = argmax0(vfin).astype(jnp.int32)                       # [1, B]
    pred_ref[T - 1] = best

    def back_step(i, best):
        t = T - 1 - i
        cur = lane_iota == best                                  # [K, B] bool
        hist_t = hist_ref[t].astype(jnp.float32)
        prev = jnp.sum(jnp.where(cur, hist_t, 0.0),
                       axis=0, keepdims=True).astype(jnp.int32)  # [1, B]
        pred_ref[t - 1] = prev
        return prev

    lax.fori_loop(0, T - 1, back_step, best)


def crf_pallas(em_tkb, tags_t1b, mask_t1b, trans, start_k1, end_k1):
    T, K, B = em_tkb.shape
    # Batch tiling: each grid step handles an independent lane-slab of the batch,
    # bounding VMEM and sharding across TensorCores via 'parallel'.
    tb = 128 if B % 128 == 0 else B
    return pl.pallas_call(
        _crf_kernel,
        out_shape=(
            jax.ShapeDtypeStruct((1, B), jnp.float32),           # per-seq llh
            jax.ShapeDtypeStruct((T, 1, B), jnp.int32),          # Viterbi tag indices
        ),
        grid=(B // tb,),
        in_specs=[
            pl.BlockSpec((T, K, tb), lambda b: (0, 0, b)),
            pl.BlockSpec((T, 1, tb), lambda b: (0, 0, b)),
            pl.BlockSpec((T, 1, tb), lambda b: (0, 0, b)),
            pl.BlockSpec((K, K), lambda b: (0, 0)),
            pl.BlockSpec((K, 1), lambda b: (0, 0)),
            pl.BlockSpec((K, 1), lambda b: (0, 0)),
        ],
        out_specs=(
            pl.BlockSpec((1, tb), lambda b: (0, b)),
            pl.BlockSpec((T, 1, tb), lambda b: (0, 0, b)),
        ),
        scratch_shapes=[pltpu.VMEM((T, K, tb), jnp.int32)],      # backpointers
        compiler_params=pltpu.CompilerParams(dimension_semantics=("parallel",)),
    )(em_tkb, tags_t1b, mask_t1b, trans, start_k1, end_k1)


# ---------------------------------------------------------------------------
# Wrapper reproducing onlyCrf.forward semantics.
# ---------------------------------------------------------------------------
def only_crf_forward(params, src, label, padding_mask=None,
                     batch_sequence_max_len=None):
    B, S = src.shape
    if batch_sequence_max_len is None or batch_sequence_max_len <= 0:
        batch_sequence_max_len = S
    T = int(batch_sequence_max_len)
    src = src[:, :T]
    label = label[:, :T]
    if padding_mask is not None:
        padding_mask = padding_mask[:, :T]

    H = params["emb_table"].shape[1]
    K = params["trans"].shape[0]

    # WordEmbedding: token-embedding lookup (gather glue); LayerNorm + Linear in Pallas.
    # TODO(synk): dropout layers are identity here (inference semantics).
    emb = params["emb_table"][src]                                   # [B, T, H]
    emissions2d = emissions_pallas(
        emb.reshape(B * T, H),
        params["ln_gamma"], params["ln_beta"],
        params["out_w"], params["out_b"])                            # [B*T, K]
    emissions = emissions2d.reshape(B, T, K)

    # CRF layout: time-major, tags on sublanes, batch on lanes.
    em_tkb = jnp.transpose(emissions, (1, 2, 0))                     # [T, K, B]
    tags_t1b = jnp.transpose(label.astype(jnp.int32), (1, 0))[:, None, :]  # [T, 1, B]
    if padding_mask is None:
        mask = jnp.ones((B, T), jnp.float32)
    else:
        mask = padding_mask.astype(jnp.float32)
    mask_t1b = jnp.transpose(mask, (1, 0))[:, None, :]               # [T, 1, B]

    llh, pred = crf_pallas(em_tkb, tags_t1b, mask_t1b,
                           params["trans"],
                           params["start"].reshape(K, 1),
                           params["end"].reshape(K, 1))

    loss = -jnp.sum(llh) / B
    predict = jnp.transpose(pred[:, 0, :], (1, 0)).reshape(-1)       # [B*T] int32
    label_flat = label.reshape(-1)
    label_mask = (label_flat > 0).astype(jnp.int32)
    predict = predict * label_mask
    correct = jnp.sum((predict == label_flat).astype(jnp.float32))
    return loss, correct, predict, label_flat


def init_params(key, vocab, H, K):
    ks = jax.random.split(key, 6)
    return dict(
        emb_table=jax.random.normal(ks[0], (vocab, H), jnp.float32) * 0.02,
        ln_gamma=jnp.ones((1, H), jnp.float32),
        ln_beta=jnp.zeros((1, H), jnp.float32),
        out_w=jax.random.normal(ks[1], (H, K), jnp.float32) * 0.05,
        out_b=jax.random.normal(ks[2], (1, K), jnp.float32) * 0.05,
        trans=jax.random.uniform(ks[3], (K, K), jnp.float32, -0.1, 0.1),
        start=jax.random.uniform(ks[4], (1, K), jnp.float32, -0.1, 0.1),
        end=jax.random.uniform(ks[5], (1, K), jnp.float32, -0.1, 0.1),
    )


if __name__ == "__main__":
    B, S, H, K, vocab = 2, 8, 32, 8, 50
    key = jax.random.PRNGKey(0)
    pkey, dkey = jax.random.split(key)
    params = init_params(pkey, vocab, H, K)

    k1, k2 = jax.random.split(dkey)
    src = jax.random.randint(k1, (B, S), 1, vocab, dtype=jnp.int32)
    lengths = jnp.array([8, 5], jnp.int32)
    padding_mask = (jnp.arange(S)[None, :] < lengths[:, None]).astype(jnp.int32)
    label = jax.random.randint(k2, (B, S), 1, K, dtype=jnp.int32) * padding_mask

    loss, correct, predict, lab = only_crf_forward(params, src, label, padding_mask)
    jax.block_until_ready((loss, correct, predict, lab))
    print("KERNEL_OK")
</pallas_src>

<mosaic_0001>
module attributes {stable_mosaic.version = 11 : i64} {
  func.func @_emission_kernel(%arg0: i32, %arg1: memref<16x32xf32, #tpu.memory_space<vmem>>, %arg2: memref<1x32xf32, #tpu.memory_space<vmem>>, %arg3: memref<1x32xf32, #tpu.memory_space<vmem>>, %arg4: memref<32x128xf32, #tpu.memory_space<vmem>>, %arg5: memref<1x128xf32, #tpu.memory_space<vmem>>, %arg6: memref<16x128xf32, #tpu.memory_space<vmem>>) attributes {dimension_semantics = [#tpu.dimension_semantics<parallel>], iteration_bounds = array<i64: 1>, scalar_prefetch = 0 : i64, scratch_operands = 0 : i64, tpu.core_type = #tpu.core_type<tc>, window_params = [{transform_indices = @transform_0, window_bounds = array<i64: 16, 32>}, {pipeline_mode = #tpu.pipeline_mode<synchronous>, transform_indices = @transform_1, window_bounds = array<i64: 1, 32>}, {pipeline_mode = #tpu.pipeline_mode<synchronous>, transform_indices = @transform_2, window_bounds = array<i64: 1, 32>}, {pipeline_mode = #tpu.pipeline_mode<synchronous>, transform_indices = @transform_3, window_bounds = array<i64: 32, 128>}, {pipeline_mode = #tpu.pipeline_mode<synchronous>, transform_indices = @transform_4, window_bounds = array<i64: 1, 128>}, {transform_indices = @transform_5, window_bounds = array<i64: 16, 128>}]} {
    %c0 = arith.constant 0 : index
    %c0_0 = arith.constant 0 : index
    %0 = vector.load %arg1[%c0, %c0_0] : memref<16x32xf32, #tpu.memory_space<vmem>>, vector<16x32xf32>
    %cst = arith.constant dense<0.000000e+00> : vector<16xf32>
    %1 = vector.multi_reduction <add>, %0, %cst [1] : vector<16x32xf32> to vector<16xf32>
    %2 = vector.shape_cast %1 : vector<16xf32> to vector<16x1xf32>
    %cst_1 = arith.constant 3.200000e+01 : f32
    %3 = vector.broadcast %cst_1 : f32 to vector<16x1xf32>
    %4 = arith.divf %2, %3 : vector<16x1xf32>
    %5 = vector.broadcast %4 : vector<16x1xf32> to vector<16x32xf32>
    %6 = arith.subf %0, %5 : vector<16x32xf32>
    %7 = vector.broadcast %4 : vector<16x1xf32> to vector<16x32xf32>
    %8 = arith.subf %0, %7 : vector<16x32xf32>
    %9 = arith.mulf %6, %8 : vector<16x32xf32>
    %cst_2 = arith.constant dense<0.000000e+00> : vector<16xf32>
    %10 = vector.multi_reduction <add>, %9, %cst_2 [1] : vector<16x32xf32> to vector<16xf32>
    %11 = vector.shape_cast %10 : vector<16xf32> to vector<16x1xf32>
    %cst_3 = arith.constant 3.200000e+01 : f32
    %12 = vector.broadcast %cst_3 : f32 to vector<16x1xf32>
    %13 = arith.divf %11, %12 : vector<16x1xf32>
    %14 = vector.broadcast %4 : vector<16x1xf32> to vector<16x32xf32>
    %15 = arith.subf %0, %14 : vector<16x32xf32>
    %cst_4 = arith.constant 9.99999997E-7 : f32
    %16 = vector.broadcast %cst_4 : f32 to vector<16x1xf32>
    %17 = arith.addf %13, %16 : vector<16x1xf32>
    %18 = math.rsqrt %17 : vector<16x1xf32>
    %19 = vector.broadcast %18 : vector<16x1xf32> to vector<16x32xf32>
    %20 = arith.mulf %15, %19 : vector<16x32xf32>
    %c0_5 = arith.constant 0 : index
    %c0_6 = arith.constant 0 : index
    %21 = vector.load %arg2[%c0_5, %c0_6] : memref<1x32xf32, #tpu.memory_space<vmem>>, vector<1x32xf32>
    %22 = vector.broadcast %21 : vector<1x32xf32> to vector<16x32xf32>
    %23 = arith.mulf %20, %22 : vector<16x32xf32>
    %c0_7 = arith.constant 0 : index
    %c0_8 = arith.constant 0 : index
    %24 = vector.load %arg3[%c0_7, %c0_8] : memref<1x32xf32, #tpu.memory_space<vmem>>, vector<1x32xf32>
    %25 = vector.broadcast %24 : vector<1x32xf32> to vector<16x32xf32>
    %26 = arith.addf %23, %25 : vector<16x32xf32>
    %c0_9 = arith.constant 0 : index
    %c0_10 = arith.constant 0 : index
    %27 = vector.load %arg4[%c0_9, %c0_10] : memref<32x128xf32, #tpu.memory_space<vmem>>, vector<32x128xf32>
    %cst_11 = arith.constant dense<0.000000e+00> : vector<16x128xf32>
    %28 = tpu.matmul %26, %27, %cst_11 {dimension_numbers = #tpu.dot_dimension_numbers<[1], [0], [0], [1], [0, 0, 1, 1], [], []>} : vector<16x32xf32>, vector<32x128xf32>, vector<16x128xf32> -> vector<16x128xf32>
    %c0_12 = arith.constant 0 : index
    %c0_13 = arith.constant 0 : index
    %29 = vector.load %arg5[%c0_12, %c0_13] : memref<1x128xf32, #tpu.memory_space<vmem>>, vector<1x128xf32>
    %30 = vector.broadcast %29 : vector<1x128xf32> to vector<16x128xf32>
    %31 = arith.addf %28, %30 : vector<16x128xf32>
    %c0_14 = arith.constant 0 : index
    %c0_15 = arith.constant 0 : index
    %32 = vector.load %arg6[%c0_14, %c0_15] : memref<16x128xf32, #tpu.memory_space<vmem>>, vector<16x128xf32>
    tpu.vector_store %arg6[%c0_14, %c0_15], %31 {strides = array<i32>} : memref<16x128xf32, #tpu.memory_space<vmem>>, vector<16x128xf32>,
    return
  }
  func.func @transform_0(%arg0: i32) -> (i32, i32) {
    %c0_i32 = arith.constant 0 : i32
    %c0_i32_0 = arith.constant 0 : i32
    return %arg0, %c0_i32 : i32, i32
  }
  func.func @transform_1(%arg0: i32) -> (i32, i32) {
    %c0_i32 = arith.constant 0 : i32
    %c0_i32_0 = arith.constant 0 : i32
    %c0_i32_1 = arith.constant 0 : i32
    return %c0_i32, %c0_i32_0 : i32, i32
  }
  func.func @transform_2(%arg0: i32) -> (i32, i32) {
    %c0_i32 = arith.constant 0 : i32
    %c0_i32_0 = arith.constant 0 : i32
    %c0_i32_1 = arith.constant 0 : i32
    return %c0_i32, %c0_i32_0 : i32, i32
  }
  func.func @transform_3(%arg0: i32) -> (i32, i32) {
    %c0_i32 = arith.constant 0 : i32
    %c0_i32_0 = arith.constant 0 : i32
    %c0_i32_1 = arith.constant 0 : i32
    return %c0_i32, %c0_i32_0 : i32, i32
  }
  func.func @transform_4(%arg0: i32) -> (i32, i32) {
    %c0_i32 = arith.constant 0 : i32
    %c0_i32_0 = arith.constant 0 : i32
    %c0_i32_1 = arith.constant 0 : i32
    return %c0_i32, %c0_i32_0 : i32, i32
  }
  func.func @transform_5(%arg0: i32) -> (i32, i32) {
    %c0_i32 = arith.constant 0 : i32
    %c0_i32_0 = arith.constant 0 : i32
    return %arg0, %c0_i32 : i32, i32
  }
}

</mosaic_0001>

<bundles_post_ra>
// kernel: tpu_custom_call.1
= control target key start
LH: loop header
LB: loop body
LE: loop exit
PB: predicated region body
PF: predicated region fallthrough
CT: control target
= control target key end

     0   :  { %10 = vsyncpa [#allocation3], 0  ;;  %s415_s0 = inlined_call_operand.hbm [shape: f32[16,32], index: 0, kind: input, shape index: {}]   ;;  %s416_s1 = inlined_call_operand.vmem [shape: f32[1,32], index: 1, kind: input, shape index: {}]   ;;  %s417_s2 = inlined_call_operand.vmem [shape: f32[1,32], index: 2, kind: input, shape index: {}]   ;;  %s418_s3 = inlined_call_operand.hbm [shape: f32[32,128], index: 3, kind: input, shape index: {}]   ;;  %s419_s4 = inlined_call_operand.vmem [shape: f32[1,128], index: 4, kind: input, shape index: {}]   ;;  %s420_s5 = inlined_call_operand.hbm [shape: f32[16,128], index: 5, kind: output, shape index: {}]  }
   0x1   :  { %11 = vsyncpa [#allocation6], 0 }
   0x2   :  { %12 = vsyncpa [#allocation4], 0  ;;  %s320_s18 = smov [#allocation2]   ;;  %s248_s22 = scalar_lea.hbm %s415_s0, 256 }
   0x3   :  { %s18_s19 = sshll.u32 %s320_s18, 4  ;;  %p249_p0 = scmp.ne.s32.totalorder %s415_s0, %s248_s22  ;;  %s19_s19 = int_to_ptr.vmem [resolvable:$true] %s18_s19 }
   0x4   :  { %p252_p1 = scmp.lt.u32.totalorder %s248_s22, %s415_s0 }
   0x6   :  { %p254_p2 = pnand %p252_p1, %p249_p0 }
   0x8   :  { %257 = shalt.err (!%p254_p2)
}
   0x9   :  { %s258_s27 = scalar_lea.vmem %s19_s19, 256  ;;  %p263_p4 = scmp.lt.s32.totalorder %s19_s19, %s19_s19 }
   0xa   :  { %p259_p3 = scmp.ne.s32.totalorder %s19_s19, %s258_s27  ;;  %p264_p5 = scmp.lt.s32.totalorder %s258_s27, %s258_s27 }
   0xc   :  { %p265_p6 = por %p264_p5, %p263_p4 }
   0xe   :  { %p266_p7 = pnand %p265_p6, %p259_p3 }
  0x10   :  { %269 = shalt.err (!%p266_p7)
}
  0x11   :  { %s321_s28 = smov 128   ;;  %s322_s29 = smov 8  }
  0x12   :  { %24 = dma.hbm_to_vmem [thread:$0]  %s415_s0, 256, %s19_s19, [#allocation3], %s321_s28, %s321_s28, %s322_s29  }
  0x13   :  { %s323_s7 = smov [#allocation5]   ;;  %s270_s11 = scalar_lea.hbm %s418_s3, 512 }
  0x14   :  { %s34_s8 = sshll.u32 %s323_s7, 4  ;;  %p271_p8 = scmp.ne.s32.totalorder %s418_s3, %s270_s11  ;;  %s35_s8 = int_to_ptr.vmem [resolvable:$true] %s34_s8 }
  0x15   :  { %p274_p9 = scmp.lt.u32.totalorder %s270_s11, %s418_s3 }
  0x17   :  { %p276_p10 = pnand %p274_p9, %p271_p8 }
  0x19   :  { %279 = shalt.err (!%p276_p10)
}
  0x1a   :  { %s280_s16 = scalar_lea.vmem %s35_s8, 512  ;;  %p285_p12 = scmp.lt.s32.totalorder %s35_s8, %s35_s8 }
  0x1b   :  { %p281_p11 = scmp.ne.s32.totalorder %s35_s8, %s280_s16  ;;  %p286_p13 = scmp.lt.s32.totalorder %s280_s16, %s280_s16 }
  0x1d   :  { %p287_p0 = por %p286_p13, %p285_p12 }
  0x1f   :  { %p288_p1 = pnand %p287_p0, %p281_p11 }
  0x21   :  { %291 = shalt.err (!%p288_p1)
}
  0x22   :  { %40 = dma.hbm_to_vmem [thread:$0]  %s418_s3, 512, %s35_s8, [#allocation6], %s321_s28, %s321_s28, %s322_s29  }
  0x23   :  { %314 = dma.done.wait [#allocation3], 256  }
  0x24   :  { %315 = vsyncadd [#allocation3], 4294967040 }
  0x25   :  { %316 = dma.done.wait [#allocation6], 512  }
  0x26   :  { %317 = vsyncadd [#allocation6], 4294966784  ;;  %vm51_vm0 = vcmask 261120   ;;  %v49_v0 = vld [vmem:[#allocation2] sm:$0xff]  ;;  %v50_v1 = vld [vmem:[#allocation2 + $0x8] sm:$0xff] }
  0x27   :  { %v52_v2 = vsel %vm51_vm0, %v49_v0, 0.0  ;;  %v55_v3 = vsel %vm51_vm0, %v50_v1, 0.0  ;;  %v97_v14 = vld [vmem:[#allocation5] sm:$0xff]  ;;  %v98_v15 = vld [vmem:[#allocation5 + $0x8] sm:$0xff]  ;;  %v99_v16 = vld [vmem:[#allocation5 + $0x10] sm:$0xff] }
  0x28   :  { %53 = vadd.xlane.f32.xlu0 %v52_v2  ;;  %v231_v17 = vpack.c.bf16 %v98_v15, %v97_v14  ;;  %v100_v18 = vld [vmem:[#allocation5 + $0x18] sm:$0xff]  ;;  %v209_v27 = vld [vmem:[%s416_s1] ss:$0 sm:$0xff]  ;;  %s324_s1 = smov [#allocation7]  }
  0x29   :  { %v235_v19 = vpack.c.bf16 %v100_v18, %v99_v16  ;;  %v210_v29 = vld [vmem:[%s417_s2] ss:$0 sm:$0xff]  ;;  %s196_s23 = sshll.u32 %s324_s1, 4  ;;  %s197_s23 = int_to_ptr.vmem [resolvable:$true] %s196_s23 }
  0x2a   :  { %232 = vmatprep.subr.bf16.mxu0 %v231_v17  ;;  %v211_v36 = vld [vmem:[%s419_s4] ss:$0 sm:$0xff]  ;;  %s292_s2 = scalar_lea.vmem %s197_s23, 256  ;;  %p297_p3 = scmp.lt.s32.totalorder %s197_s23, %s197_s23 }
  0x2b   :  { %234 = vmatpush3.bf16.msra.mxu0 %v231_v17  ;;  %p293_p2 = scmp.ne.s32.totalorder %s197_s23, %s292_s2  ;;  %p298_p4 = scmp.lt.s32.totalorder %s292_s2, %s292_s2 }
  0x2c   :  { %56 = vadd.xlane.f32.xlu0 %v55_v3  ;;  %236 = vmatprep.subr.bf16.mxu0 %v235_v19 }
  0x2d   :  { %p299_p5 = por %p298_p4, %p297_p3 }
  0x2f   :  { %238 = vmatpush3.bf16.msra.mxu0 %v235_v19  ;;  %p300_p6 = pnand %p299_p5, %p293_p2 }
  0xb5   :  { %v54_v4 = vpop.xlane.xlu0 %53 }
  0xb6   :  { %v59_v5 = vmul.f32 0.03125, %v54_v4 }
  0xb8   :  { %v61_v6 = vsub.f32 %v49_v0, %v59_v5 }
  0xb9   :  { %v57_v7 = vpop.xlane.xlu0 %56 }
  0xba   :  { %v60_v8 = vmul.f32 0.03125, %v57_v7  ;;  %v63_v9 = vmul.f32 %v61_v6, %v61_v6 }
  0xbc   :  { %v62_v10 = vsub.f32 %v50_v1, %v60_v8  ;;  %v65_v11 = vsel %vm51_vm0, %v63_v9, 0.0 }
  0xbd   :  { %66 = vadd.xlane.f32.xlu1 %v65_v11 }
  0xbe   :  { %v64_v12 = vmul.f32 %v62_v10, %v62_v10 }
  0xc0   :  { %v68_v13 = vsel %vm51_vm0, %v64_v12, 0.0 }
  0xc1   :  { %69 = vadd.xlane.f32.xlu1 %v68_v13 }
 0x14a   :  { %v67_v20 = vpop.xlane.xlu1 %66 }
 0x14b   :  { %v71_v21 = vmul.f32 0.03125, %v67_v20 }
 0x14d   :  { %v73_v22 = vadd.f32 1e-06, %v71_v21 }
 0x14e   :  { %v70_v23 = vpop.xlane.xlu1 %69 }
 0x14f   :  { %244 = vrsqrt.f32 %v73_v22  ;;  %v72_v24 = vmul.f32 0.03125, %v70_v23 }
 0x151   :  { %v74_v25 = vadd.f32 1e-06, %v72_v24 }
 0x153   :  { %246 = vrsqrt.f32 %v74_v25 }
 0x159   :  { %v245_v26 = vpop.eup %244 }
 0x15a   :  { %v77_v28 = vmul.f32 %v245_v26, %v61_v6 }
 0x15c   :  { %v86_v30 = vmul.f32 %v209_v27, %v77_v28 }
 0x15d   :  { %v247_v31 = vpop.eup %246 }
 0x15e   :  { %v78_v32 = vmul.f32 %v247_v31, %v62_v10  ;;  %v95_v33 = vadd.f32 %v210_v29, %v86_v30 }
 0x160   :  { %v87_v34 = vmul.f32 %v209_v27, %v78_v32  ;;  %228 = vmatprep.mubr.msk.f32.mxu0 %vm51_vm0, %v95_v33 }
 0x162   :  { %v96_v35 = vadd.f32 %v210_v29, %v87_v34 }
 0x164   :  { %229 = vmatmul.mubr.msk.f32.vlgmr.msra.gmra.mrb[0].mxu0 %vm51_vm0, %v96_v35 }
 0x237   :  { %v230_v37 = vpop.f32.mrb[0].mxu0 }
 0x238   :  { %v186_v38 = vadd.f32 %v230_v37, %v211_v36  ;;  %v180_v39 = vpop.f32.mrb[1].mxu0 }
 0x239   :  { %v181_v40 = vadd.f32 %v211_v36, %v180_v39 }
 0x23a   :  { %190 = vst [vmem:[#allocation7 + $0x8] sm:$0xff] %v186_v38 }
 0x23b   :  { %189 = vst [vmem:[#allocation7] sm:$0xff] %v181_v40 }
 0x23c   :  { %303 = shalt.err (!%p300_p6)
}
 0x23d   :  { %s304_s4 = scalar_lea.hbm %s420_s5, 256 }
 0x23e   :  { %p305_p7 = scmp.ne.s32.totalorder %s420_s5, %s304_s4  ;;  %p308_p8 = scmp.lt.u32.totalorder %s304_s4, %s420_s5 }
 0x240   :  { %p310_p9 = pnand %p308_p8, %p305_p7 }
 0x242   :  { %313 = shalt.err (!%p310_p9)
}
 0x243   :  { %202 = dma.vmem_to_hbm [thread:$0]  %s197_s23, 256, %s420_s5, [#allocation4], %s321_s28, %s321_s28, %s322_s29  }
 0x244   :  { %318 = dma.done.wait [#allocation4], 256  }
 0x245   :  { %319 = vsyncadd [#allocation4], 4294967040 }
 0x246   :  { %206 = vsyncpa [#allocation3], 1 }
 0x247   :  { %207 = vsyncpa [#allocation6], 1 }
 0x248   :  { %208 = vsyncpa [#allocation4], 1 }

</bundles_post_ra>
